<compile_context>
chip_gen: v6e
topology: v6e:2x2x1
jax: 0.10.0
libtpu: 0.0.40
codegen_flags: <defaults>
</compile_context>

<pallas_src>
import functools
import math

import jax
import jax.numpy as jnp
from jax import lax
from jax.experimental import pallas as pl
from jax.experimental.pallas import tpu as pltpu

_MIB = 1024 * 1024


def _canon_norm(norm_type):
    nt = norm_type.lower()
    if nt in ("l1",):
        return "l1"
    if nt in ("mse", "frob", "f"):
        return "mse"
    if nt in ("lad", "l21", "l2"):
        return "l2"
    raise ValueError("Norm type error!")


def _round_up(x, m):
    return ((x + m - 1) // m) * m


def _vmem_capacity_bytes():
    try:
        cap = int(pltpu.get_tpu_info().vmem_capacity_bytes)
        if cap > 0:
            return cap
    except Exception:
        pass
    return 64 * _MIB  # conservative (v7x-sized) fallback


def principal_kernel(gs_ref, gt_ref, a_ref, at_ref, zs_ref, zt_ref, part_ref, *,
                     normalize, norm_type, n_true, block_rows, has_remainder,
                     matmul_dtype):
    b = pl.program_id(0)

    a_mm = a_ref[...].astype(matmul_dtype)      # (F, K) resident
    at_mm = at_ref[...].astype(matmul_dtype)    # (K, F) resident (no vxpose/step)

    if has_remainder:
        # Zero the out-of-range rows of the final tile: zero rows contribute
        # exactly 0 to every residual norm and produce z rows of 0 (which are
        # discarded by the output-block clipping anyway).
        valid = jnp.minimum(block_rows, n_true - b * block_rows)
        row_id = lax.broadcasted_iota(jnp.int32, (block_rows, 1), 0)
        row_ok = row_id < valid                 # (TB, 1) bool
    else:
        row_ok = None

    def half(g_ref, z_ref):
        g = g_ref[...]                          # (TB, F) f32
        if row_ok is not None:
            g = jnp.where(row_ok, g, 0.0)
        # Projection: natural-form MXU matmul, f32 accumulation.
        z = jnp.dot(g.astype(matmul_dtype), a_mm,
                    preferred_element_type=jnp.float32)          # (TB, K)
        if normalize:
            # torch F.normalize(p=2, dim=-1, eps=1e-12) == z / max(||z||, 1e-12)
            nrm2 = jnp.sum(z * z, axis=-1, keepdims=True)
            z = z * lax.rsqrt(jnp.maximum(nrm2, 1e-24))          # EUP rsqrt
        z_ref[...] = z                                           # true-K store
        # Reconstruction with the resident A.T (natural MXU form).
        rec = jnp.dot(z.astype(matmul_dtype), at_mm,
                      preferred_element_type=jnp.float32)        # (TB, F)
        resid = g - rec
        if norm_type == "l1":
            return jnp.sum(jnp.abs(resid))
        if norm_type == "mse":
            return jnp.sum(resid * resid)
        # 'l2' (LAD / L21): per-row 2-norm, then sum over rows.
        return jnp.sum(jnp.sqrt(jnp.sum(resid * resid, axis=1, keepdims=True)))

    total = half(gs_ref, zs_ref) + half(gt_ref, zt_ref)
    # Per-tile partial sum -> own output block (keeps the grid 'parallel').
    part_ref[...] = jnp.full(part_ref.shape, total, dtype=jnp.float32)


def principal_forward(g_s, g_t, A, *, lambda1=2.0, lambda2=0.1,
                      normalize=False, norm_type="l1", block_rows=None,
                      matmul_dtype=jnp.float32):
    assert g_s.shape == g_t.shape
    n, f = g_s.shape
    assert A.shape[0] == f
    k = A.shape[1]
    norm_type = _canon_norm(norm_type)

    g_s = g_s.astype(jnp.float32)
    g_t = g_t.astype(jnp.float32)
    a = A.astype(jnp.float32)
    a_t = a.T                                   # tiny (K,F) copy, resident in VMEM

    # ---- tile sizing against the real per-chip VMEM budget -------------------
    cap = _vmem_capacity_bytes()                # 128 MiB (v5e/v6e) / 64 MiB (v7x)
    budget = (3 * cap) // 4                     # headroom for Mosaic scratch
    fixed = 4 * (4 * f * k) + 2 * _MIB          # A + A.T, double-buffered, + slack
    per_row = 4 * (8 * f + 6 * k)               # 2 double-buffered g tiles, z tiles,
                                                # rec/resid temporaries (both halves)
    if block_rows is None:
        tb = max(8, (budget - fixed) // per_row)
        tb = min(tb, 2048)
        tb = (tb // 256) * 256 if tb >= 256 else (tb // 8) * 8
        tb = max(8, tb)
    else:
        tb = max(8, _round_up(int(block_rows), 8))
    if tb >= n:
        tb = n                                  # single full-extent row block
    nb = (n + tb - 1) // tb
    has_remainder = (n % tb) != 0

    vmem_need = fixed + per_row * tb + 2 * _MIB
    vmem_limit = int(min(max(vmem_need, 32 * _MIB), budget))

    kern = functools.partial(
        principal_kernel, normalize=bool(normalize), norm_type=norm_type,
        n_true=n, block_rows=tb, has_remainder=has_remainder,
        matmul_dtype=matmul_dtype)

    flops = 8 * n * f * k                       # two matmuls per half, two halves
    bytes_accessed = 4 * (2 * n * f + 2 * f * k + 2 * n * k + nb * 8 * 128)

    z_s, z_t, partials = pl.pallas_call(
        kern,
        out_shape=(
            jax.ShapeDtypeStruct((n, k), jnp.float32),
            jax.ShapeDtypeStruct((n, k), jnp.float32),
            jax.ShapeDtypeStruct((nb, 8, 128), jnp.float32),
        ),
        grid=(nb,),
        in_specs=[
            pl.BlockSpec((tb, f), lambda b: (b, 0)),     # g_s tile (pipelined)
            pl.BlockSpec((tb, f), lambda b: (b, 0)),     # g_t tile (pipelined)
            pl.BlockSpec((f, k), lambda b: (0, 0)),      # A   resident
            pl.BlockSpec((k, f), lambda b: (0, 0)),      # A.T resident
        ],
        out_specs=(
            pl.BlockSpec((tb, k), lambda b: (b, 0)),     # z_s (true K width)
            pl.BlockSpec((tb, k), lambda b: (b, 0)),     # z_t
            pl.BlockSpec((1, 8, 128), lambda b: (b, 0, 0)),  # per-tile partial sum
        ),
        compiler_params=pltpu.CompilerParams(
            dimension_semantics=("parallel",),           # megacore-shardable
            vmem_limit_bytes=vmem_limit),
        cost_estimate=pl.CostEstimate(
            flops=int(flops),
            transcendentals=int(2 * n if normalize else 0),
            bytes_accessed=int(bytes_accessed)),
    )(g_s, g_t, a, a_t)

    # Tiny scalar combine + batch-invariant proj term: plain XLA in the wrapper.
    residual_sum = jnp.sum(partials[:, 0, 0])
    hp = lax.Precision.HIGHEST
    ata = jnp.matmul(a.T, a, precision=hp)               # (K, K) -> negligible
    proj = jnp.mean(jnp.square(ata - jnp.eye(k, dtype=jnp.float32)))
    loss = (float(lambda1) / float(n)) * residual_sum + float(lambda2) * proj
    return z_s, z_t, loss


def principal_reference(g_s, g_t, A, *, lambda1=2.0, lambda2=0.1,
                        normalize=False, norm_type="l1"):
    norm_type = _canon_norm(norm_type)
    hp = lax.Precision.HIGHEST
    z_s = jnp.matmul(g_s, A, precision=hp)
    z_t = jnp.matmul(g_t, A, precision=hp)
    if normalize:
        def _nrm(z):
            return z / jnp.maximum(jnp.linalg.norm(z, axis=-1, keepdims=True),
                                   1e-12)
        z_s, z_t = _nrm(z_s), _nrm(z_t)

    def pca_err(y, z):
        rec = jnp.matmul(z, A.T, precision=hp)
        d = y - rec
        if norm_type == "l1":
            return jnp.mean(jnp.sum(jnp.abs(d), axis=1))
        if norm_type == "mse":
            return jnp.mean(jnp.sum(d * d, axis=1))
        return jnp.mean(jnp.sqrt(jnp.sum(d * d, axis=1)))

    k = A.shape[1]
    ata = jnp.matmul(A.T, A, precision=hp)
    proj = jnp.mean(jnp.square(ata - jnp.eye(k, dtype=A.dtype)))
    loss = (lambda1 * pca_err(g_t, z_t) + lambda1 * pca_err(g_s, z_s)
            + lambda2 * proj)
    return z_s, z_t, loss


def _check(out, ref, z_tol=1e-4, loss_tol=1e-3):
    z_s, z_t, loss = out
    z_s_r, z_t_r, loss_r = ref
    assert jnp.allclose(z_s, z_s_r, atol=z_tol, rtol=z_tol)
    assert jnp.allclose(z_t, z_t_r, atol=z_tol, rtol=z_tol)
    assert jnp.allclose(loss, loss_r, atol=loss_tol, rtol=loss_tol)


if __name__ == "__main__":
    # TODO(synk): `compute_loss=True` only detaches inputs in torch (autograd
    # bookkeeping); it has no forward-value effect, so it is not modeled here.
    key = jax.random.PRNGKey(0)

    def make_case(k_, batch, in_features, intrinsic_size):
        k_gs, k_gt, k_a = jax.random.split(k_, 3)
        g_s = jax.random.normal(k_gs, (batch, in_features), jnp.float32)
        g_t = jax.random.normal(k_gt, (batch, in_features), jnp.float32)
        bound = math.sqrt(6.0 / (in_features + intrinsic_size))  # xavier_uniform_
        A = jax.random.uniform(k_a, (in_features, intrinsic_size),
                               jnp.float32, minval=-bound, maxval=bound)
        return g_s, g_t, A

    k1, k2, k3, k4 = jax.random.split(key, 4)

    # case 1: multi-step grid (N=64, TB=32), defaults (l1, no normalize).
    g_s, g_t, A = make_case(k1, 64, 256, 32)
    out = principal_forward(g_s, g_t, A, block_rows=32)
    jax.block_until_ready(out)
    _check(out, principal_reference(g_s, g_t, A))

    # case 2: single full-extent row block with ragged dims (N=13, F=160, K=24).
    g_s, g_t, A = make_case(k2, 13, 160, 24)
    out = principal_forward(g_s, g_t, A, block_rows=16)
    jax.block_until_ready(out)
    _check(out, principal_reference(g_s, g_t, A))

    # case 3: partial final tile (N=24, TB=16 -> 8 masked rows) + normalize + MSE.
    g_s, g_t, A = make_case(k3, 24, 128, 16)
    out = principal_forward(g_s, g_t, A, normalize=True, norm_type="mse",
                            block_rows=16)
    jax.block_until_ready(out)
    _check(out, principal_reference(g_s, g_t, A, normalize=True,
                                    norm_type="mse"))

    # case 4: automatic VMEM-budgeted tile sizing + L2 (LAD) branch.
    g_s, g_t, A = make_case(k4, 40, 192, 16)
    out = principal_forward(g_s, g_t, A, norm_type="l2")
    jax.block_until_ready(out)
    _check(out, principal_reference(g_s, g_t, A, norm_type="l2"))

    # case 5: opt-in bf16 MXU path (f32 accumulation), loose tolerances.
    g_s, g_t, A = make_case(k1, 64, 256, 32)
    out = principal_forward(g_s, g_t, A, block_rows=32,
                            matmul_dtype=jnp.bfloat16)
    jax.block_until_ready(out)
    _check(out, principal_reference(g_s, g_t, A), z_tol=5e-2, loss_tol=5e-2)

    print("KERNEL_OK")
</pallas_src>

<mosaic_0001>
module attributes {stable_mosaic.version = 11 : i64} {
  func.func @principal_kernel(%arg0: i32, %arg1: memref<32x256xf32, #tpu.memory_space<vmem>>, %arg2: memref<32x256xf32, #tpu.memory_space<vmem>>, %arg3: memref<256x32xf32, #tpu.memory_space<vmem>>, %arg4: memref<32x256xf32, #tpu.memory_space<vmem>>, %arg5: memref<32x32xf32, #tpu.memory_space<vmem>>, %arg6: memref<32x32xf32, #tpu.memory_space<vmem>>, %arg7: memref<1x8x128xf32, #tpu.memory_space<vmem>>) attributes {dimension_semantics = [#tpu.dimension_semantics<parallel>], iteration_bounds = array<i64: 2>, scalar_prefetch = 0 : i64, scratch_operands = 0 : i64, tpu.core_type = #tpu.core_type<tc>, window_params = [{transform_indices = @transform_0, window_bounds = array<i64: 32, 256>}, {transform_indices = @transform_1, window_bounds = array<i64: 32, 256>}, {pipeline_mode = #tpu.pipeline_mode<synchronous>, transform_indices = @transform_2, window_bounds = array<i64: 256, 32>}, {pipeline_mode = #tpu.pipeline_mode<synchronous>, transform_indices = @transform_3, window_bounds = array<i64: 32, 256>}, {transform_indices = @transform_4, window_bounds = array<i64: 32, 32>}, {transform_indices = @transform_5, window_bounds = array<i64: 32, 32>}, {transform_indices = @transform_6, window_bounds = array<i64: 1, 8, 128>}]} {
    %c0 = arith.constant 0 : index
    %c0_0 = arith.constant 0 : index
    %0 = vector.load %arg3[%c0, %c0_0] : memref<256x32xf32, #tpu.memory_space<vmem>>, vector<256x32xf32>
    %c0_1 = arith.constant 0 : index
    %c0_2 = arith.constant 0 : index
    %1 = vector.load %arg4[%c0_1, %c0_2] : memref<32x256xf32, #tpu.memory_space<vmem>>, vector<32x256xf32>
    %c0_3 = arith.constant 0 : index
    %c0_4 = arith.constant 0 : index
    %2 = vector.load %arg1[%c0_3, %c0_4] : memref<32x256xf32, #tpu.memory_space<vmem>>, vector<32x256xf32>
    %cst = arith.constant dense<0.000000e+00> : vector<32x32xf32>
    %3 = tpu.matmul %2, %0, %cst {dimension_numbers = #tpu.dot_dimension_numbers<[1], [0], [0], [1], [0, 0, 1, 1], [], []>} : vector<32x256xf32>, vector<256x32xf32>, vector<32x32xf32> -> vector<32x32xf32>
    %c0_5 = arith.constant 0 : index
    %c0_6 = arith.constant 0 : index
    %4 = vector.load %arg5[%c0_5, %c0_6] : memref<32x32xf32, #tpu.memory_space<vmem>>, vector<32x32xf32>
    tpu.vector_store %arg5[%c0_5, %c0_6], %3 {strides = array<i32>} : memref<32x32xf32, #tpu.memory_space<vmem>>, vector<32x32xf32>,
    %cst_7 = arith.constant dense<0.000000e+00> : vector<32x256xf32>
    %5 = tpu.matmul %3, %1, %cst_7 {dimension_numbers = #tpu.dot_dimension_numbers<[1], [0], [0], [1], [0, 0, 1, 1], [], []>} : vector<32x32xf32>, vector<32x256xf32>, vector<32x256xf32> -> vector<32x256xf32>
    %6 = arith.subf %2, %5 : vector<32x256xf32>
    %7 = math.absf %6 : vector<32x256xf32>
    %8 = vector.shape_cast %7 : vector<32x256xf32> to vector<1x32x256xf32>
    %cst_8 = arith.constant dense<0.000000e+00> : vector<1xf32>
    %9 = vector.multi_reduction <add>, %8, %cst_8 [1, 2] : vector<1x32x256xf32> to vector<1xf32>
    %10 = vector.shape_cast %9 : vector<1xf32> to vector<1x1x1xf32>
    %11 = vector.extract %10[0, 0, 0] : f32 from vector<1x1x1xf32>
    %c0_9 = arith.constant 0 : index
    %c0_10 = arith.constant 0 : index
    %12 = vector.load %arg2[%c0_9, %c0_10] : memref<32x256xf32, #tpu.memory_space<vmem>>, vector<32x256xf32>
    %cst_11 = arith.constant dense<0.000000e+00> : vector<32x32xf32>
    %13 = tpu.matmul %12, %0, %cst_11 {dimension_numbers = #tpu.dot_dimension_numbers<[1], [0], [0], [1], [0, 0, 1, 1], [], []>} : vector<32x256xf32>, vector<256x32xf32>, vector<32x32xf32> -> vector<32x32xf32>
    %c0_12 = arith.constant 0 : index
    %c0_13 = arith.constant 0 : index
    %14 = vector.load %arg6[%c0_12, %c0_13] : memref<32x32xf32, #tpu.memory_space<vmem>>, vector<32x32xf32>
    tpu.vector_store %arg6[%c0_12, %c0_13], %13 {strides = array<i32>} : memref<32x32xf32, #tpu.memory_space<vmem>>, vector<32x32xf32>,
    %cst_14 = arith.constant dense<0.000000e+00> : vector<32x256xf32>
    %15 = tpu.matmul %13, %1, %cst_14 {dimension_numbers = #tpu.dot_dimension_numbers<[1], [0], [0], [1], [0, 0, 1, 1], [], []>} : vector<32x32xf32>, vector<32x256xf32>, vector<32x256xf32> -> vector<32x256xf32>
    %16 = arith.subf %12, %15 : vector<32x256xf32>
    %17 = math.absf %16 : vector<32x256xf32>
    %18 = vector.shape_cast %17 : vector<32x256xf32> to vector<1x32x256xf32>
    %cst_15 = arith.constant dense<0.000000e+00> : vector<1xf32>
    %19 = vector.multi_reduction <add>, %18, %cst_15 [1, 2] : vector<1x32x256xf32> to vector<1xf32>
    %20 = vector.shape_cast %19 : vector<1xf32> to vector<1x1x1xf32>
    %21 = vector.extract %20[0, 0, 0] : f32 from vector<1x1x1xf32>
    %22 = arith.addf %11, %21 : f32
    %23 = vector.broadcast %22 : f32 to vector<1x8x128xf32>
    %c0_16 = arith.constant 0 : index
    %c0_17 = arith.constant 0 : index
    %c0_18 = arith.constant 0 : index
    %24 = vector.load %arg7[%c0_16, %c0_17, %c0_18] : memref<1x8x128xf32, #tpu.memory_space<vmem>>, vector<1x8x128xf32>
    tpu.vector_store %arg7[%c0_16, %c0_17, %c0_18], %23 {strides = array<i32>} : memref<1x8x128xf32, #tpu.memory_space<vmem>>, vector<1x8x128xf32>,
    return
  }
  func.func @transform_0(%arg0: i32) -> (i32, i32) {
    %c0_i32 = arith.constant 0 : i32
    %c0_i32_0 = arith.constant 0 : i32
    return %arg0, %c0_i32 : i32, i32
  }
  func.func @transform_1(%arg0: i32) -> (i32, i32) {
    %c0_i32 = arith.constant 0 : i32
    %c0_i32_0 = arith.constant 0 : i32
    return %arg0, %c0_i32 : i32, i32
  }
  func.func @transform_2(%arg0: i32) -> (i32, i32) {
    %c0_i32 = arith.constant 0 : i32
    %c0_i32_0 = arith.constant 0 : i32
    %c0_i32_1 = arith.constant 0 : i32
    return %c0_i32, %c0_i32_0 : i32, i32
  }
  func.func @transform_3(%arg0: i32) -> (i32, i32) {
    %c0_i32 = arith.constant 0 : i32
    %c0_i32_0 = arith.constant 0 : i32
    %c0_i32_1 = arith.constant 0 : i32
    return %c0_i32, %c0_i32_0 : i32, i32
  }
  func.func @transform_4(%arg0: i32) -> (i32, i32) {
    %c0_i32 = arith.constant 0 : i32
    %c0_i32_0 = arith.constant 0 : i32
    return %arg0, %c0_i32 : i32, i32
  }
  func.func @transform_5(%arg0: i32) -> (i32, i32) {
    %c0_i32 = arith.constant 0 : i32
    %c0_i32_0 = arith.constant 0 : i32
    return %arg0, %c0_i32 : i32, i32
  }
  func.func @transform_6(%arg0: i32) -> (i32, i32, i32) {
    %c0_i32 = arith.constant 0 : i32
    %c0_i32_0 = arith.constant 0 : i32
    %c0_i32_1 = arith.constant 0 : i32
    return %arg0, %c0_i32, %c0_i32_0 : i32, i32, i32
  }
}

</mosaic_0001>

<bundles_post_ra>
// kernel: tpu_custom_call.1
= control target key start
LH: loop header
LB: loop body
LE: loop exit
PB: predicated region body
PF: predicated region fallthrough
CT: control target
= control target key end

     0   :  { %12 = vsyncpa [#allocation3], 0  ;;  %s1747_s0 = inlined_call_operand.vmem [shape: f32[64,256], index: 0, kind: input, shape index: {}]   ;;  %s1748_s1 = inlined_call_operand.vmem [shape: f32[64,256], index: 1, kind: input, shape index: {}]   ;;  %s1749_s2 = inlined_call_operand.vmem [shape: f32[256,32], index: 2, kind: input, shape index: {}]   ;;  %s1750_s3 = inlined_call_operand.vmem [shape: f32[32,256], index: 3, kind: input, shape index: {}]   ;;  %s1751_s4 = inlined_call_operand.vmem [shape: f32[64,32], index: 4, kind: output, shape index: {0}]   ;;  %s1752_s5 = inlined_call_operand.vmem [shape: f32[64,32], index: 5, kind: output, shape index: {1}]   ;;  %s1753_s6 = inlined_call_operand.hbm [shape: f32[2,8,128], index: 6, kind: output, shape index: {2}]  }
   0x1   :  { %14 = vsyncpa [#allocation3 + $0x1], 0  ;;  %s1232_s21 = smov 0   ;;  %s1234_s22 = smov 0  }
   0x2   :  { %s1236_s23 = smov 0   ;;  %s1238_s24 = smov 0  }
   0x3 LB: > { %s1253_s25 = sadd.s32 4294967295, %s1193_s24   ;;  %s964_s26 = sadd.s32 4294967294, %s1193_s24   ;;  %s1193_s24 = sphi %s1238_s24, %s1759_s24   ;;  %s1189_s23 = sphi %s1236_s23, %s1758_s23   ;;  %s1185_s22 = sphi %s1234_s22, %s1757_s22   ;;  %s1181_s21 = sphi %s1232_s21, %s1756_s21  }
   0x4   : > { %s1257_s27 = sadd.s32 1, %s1193_s24   ;;  %s173_s28 = sadd.s32 1, %s1189_s23 }
   0x5   : > { %s170_s29 = ssub.s32 %s1193_s24, %s1257_s27  ;;  %p183_p0 = scmp.ne.s32.totalorder %s1189_s23, %s1185_s22 }
   0x6   : > { %p171_p1 = scmp.eq.s32.totalorder %s170_s29, 0  ;;  %p184_p2 = scmp.eq.s32.totalorder %s1253_s25, 1 }
   0x7   : > { %p189_p3 = scmp.ne.s32.totalorder %s1185_s22, %s1181_s21  ;;  %p190_p4 = scmp.eq.s32.totalorder %s964_s26, 1 }
   0x8   : > { %s1268_s30 = scalar_select %p171_p1, %s1189_s23, %s173_s28  }
   0x9   : > { %p1270_p5 = por %p184_p2, %p183_p0  ;;  %p1274_p6 = por %p190_p4, %p189_p3 }
   0xa   : > { %p967_p7 = scmp.ge.s32.totalorder %s1193_s24, 1  ;;  %p234_p8 = scmp.lt.s32.totalorder %s1193_s24, 3 }
   0xc   : > { %p235_p9 = pnand %p967_p7, %p234_p8 }
   0xd   : > { %s969_s15 = sshll.u32 (!%p235_p9), %s1253_s25, 2  ;;  %s988_s16 = sshll.u32 (!%p235_p9), %s1253_s25, 7 }
   0xe   : > { %238 = sbr.rel (%p235_p9) target bundleno = 907 (0x38b), region = 36  ;;  %p282_p10 = scmp.lt.s32.totalorder (!%p235_p9), %s969_s15, 7 }
   0xf   : > { %s1712_s9 = scalar_lea.hbm (!%p235_p9), %s1753_s6, %s988_s16  ;;  %s1196_s12 = smov (!%p235_p9), [#allocation2]  }
  0x10   : > { %s1137_s25 = sshll.u32 (!%p235_p9), %s1196_s12, 4  ;;  %s1138_s25 = int_to_ptr.vmem [resolvable:$false] %s1137_s25 }
  0x13   : > { %v1283_v0 = vld [vmem:[%s1749_s2 + $0xf8] sm:$0xff]  ;;  %v1293_v2 = vld [vmem:[%s1749_s2 + $0xf0] sm:$0xff]  ;;  %v1306_v4 = vld [vmem:[%s1749_s2 + $0xe8] sm:$0xff]  ;;  %s1761_s15 = smov (!%p282_p10, %s969_s15), 7  ;;  %v1195_v48 = vmov 0.0   ;;  %vm440_vm0 = vcmask 261120  }
  0x14   : > { %v1288_v1 = vld [vmem:[%s1749_s2 + $0x78] sm:$0xff]  ;;  %993 = vmatprep.subr.mxu0 %v1283_v0  ;;  %v1300_v3 = vld [vmem:[%s1749_s2 + $0x70] sm:$0xff]  ;;  %v1312_v5 = vld [vmem:[%s1749_s2 + $0x68] sm:$0xff]  ;;  %s991_s11 = sshll.u32 %s1761_s15, 4  ;;  %521 = vmatprep.mubr.f32.mxu1 %v1195_v48  ;;  %s976_s18 = sshll.u32 %s1761_s15, 3 }
  0x15   : > { %994 = vmatpush3.msra.mxu0 %v1288_v1  ;;  %v1320_v6 = vld [vmem:[%s1749_s2 + $0xe0] sm:$0xff]  ;;  %v1333_v8 = vld [vmem:[%s1749_s2 + $0xd8] sm:$0xff]  ;;  %s1346_s19 = scalar_lea.vmem %s1747_s0, %s991_s11  ;;  %v1352_v10 = vld [vmem:[%s1749_s2 + $0xd0] sm:$0xff]  ;;  %s1580_s28 = scalar_lea.vmem %s1751_s4, %s976_s18 }
  0x16   : > { %995 = vmatprep.subr.mxu0 %v1293_v2  ;;  %v1326_v7 = vld [vmem:[%s1749_s2 + $0x60] sm:$0xff]  ;;  %v1339_v9 = vld [vmem:[%s1749_s2 + $0x58] sm:$0xff]  ;;  %v1358_v11 = vld [vmem:[%s1749_s2 + $0x50] sm:$0xff]  ;;  %s1602_s10 = scalar_lea.vmem %s1748_s1, %s991_s11  ;;  %s305_s13 = scalar_lea.vmem %s1752_s5, %s976_s18 }
  0x17   : > { %996 = vmatpush3.msra.mxu0 %v1300_v3  ;;  %v1364_v12 = vld [vmem:[%s1749_s2 + $0xc8] sm:$0xff]  ;;  %v1380_v15 = vld [vmem:[%s1749_s2 + $0xc0] sm:$0xff]  ;;  %v1391_v17 = vld [vmem:[%s1750_s3 + $0x38] sm:$0xff]  ;;  %s278_s15 = sand.u32 1, %s1185_s22  }
  0x18   : > { %997 = vmatprep.subr.mxu0 %v1306_v4  ;;  %v1367_v13 = vld [vmem:[%s1346_s19 + $0x8] sm:$0xff]  ;;  %v1386_v16 = vld [vmem:[%s1749_s2 + $0x40] sm:$0xff]  ;;  %v1396_v18 = vld [vmem:[%s1750_s3 + $0x30] sm:$0xff]  ;;  %481 = vmatprep.subr.mxu1 %v1391_v17 }
  0x19   : > { %998 = vmatpush3.msra.mxu0 %v1312_v5  ;;  %v1373_v14 = vld [vmem:[%s1749_s2 + $0x48] sm:$0xff]  ;;  %419 = vmatprep.mubr.f32.mxu0 %v1367_v13  ;;  %v1402_v19 = vld [vmem:[%s1749_s2 + $0xb8] sm:$0xff]  ;;  %v1413_v21 = vld [vmem:[%s1750_s3 + $0x20] sm:$0xff] }
  0x1a   : > { %999 = vmatprep.subr.mxu0 %v1320_v6  ;;  %v1408_v20 = vld [vmem:[%s1750_s3 + $0x28] sm:$0xff]  ;;  %v1419_v22 = vld [vmem:[%s1749_s2 + $0x38] sm:$0xff]  ;;  %482 = vmatpush1.msra.mxu1 %v1396_v18  ;;  %v1426_v23 = vld [vmem:[%s1749_s2 + $0xb0] sm:$0xff] }
  0x1b   : > { %1000 = vmatpush3.msra.mxu0 %v1326_v7  ;;  %483 = vmatprep.subr.mxu1 %v1408_v20  ;;  %v1433_v24 = vld [vmem:[%s1749_s2 + $0x30] sm:$0xff]  ;;  %v1440_v25 = vld [vmem:[%s1749_s2 + $0xa8] sm:$0xff]  ;;  %v1452_v27 = vld [vmem:[%s1749_s2 + $0xa0] sm:$0xff] }
  0x1c   : > { %1001 = vmatprep.subr.mxu0 %v1333_v8  ;;  %484 = vmatpush1.msra.mxu1 %v1413_v21  ;;  %v1446_v26 = vld [vmem:[%s1749_s2 + $0x28] sm:$0xff]  ;;  %v1458_v28 = vld [vmem:[%s1749_s2 + $0x20] sm:$0xff]  ;;  %v1464_v29 = vld [vmem:[%s1749_s2 + $0x98] sm:$0xff] }
  0x1d   : > { %1002 = vmatpush3.msra.mxu0 %v1339_v9  ;;  %v1470_v30 = vld [vmem:[%s1749_s2 + $0x18] sm:$0xff]  ;;  %v1476_v31 = vld [vmem:[%s1749_s2 + $0x90] sm:$0xff]  ;;  %v1488_v33 = vld [vmem:[%s1749_s2 + $0x88] sm:$0xff] }
  0x1e   : > { %1003 = vmatprep.subr.mxu0 %v1352_v10  ;;  %v1482_v32 = vld [vmem:[%s1749_s2 + $0x10] sm:$0xff]  ;;  %v1494_v34 = vld [vmem:[%s1749_s2 + $0x8] sm:$0xff]  ;;  %v1500_v35 = vld [vmem:[%s1749_s2 + $0x80] sm:$0xff] }
  0x1f   : > { %1004 = vmatpush3.msra.mxu0 %v1358_v11  ;;  %v1506_v36 = vld [vmem:[%s1749_s2] sm:$0xff]  ;;  %v1514_v38 = vld [vmem:[%s1346_s19 + $0x18] sm:$0xff]  ;;  %v1521_v39 = vld [vmem:[%s1346_s19 + $0x10] sm:$0xff] }
  0x20   : > { %1005 = vmatprep.subr.mxu0 %v1364_v12  ;;  %v1510_v37 = vld [vmem:[%s1346_s19] sm:$0xff]  ;;  %v1525_v40 = vld [vmem:[%s1346_s19 + $0x28] sm:$0xff]  ;;  %v1535_v42 = vld [vmem:[%s1346_s19 + $0x38] sm:$0xff] }
  0x21   : > { %1006 = vmatpush3.msra.mxu0 %v1373_v14  ;;  %v1532_v41 = vld [vmem:[%s1346_s19 + $0x20] sm:$0xff]  ;;  %v1540_v43 = vld [vmem:[%s1346_s19 + $0x30] sm:$0xff]  ;;  %v1546_v44 = vld [vmem:[%s1750_s3 + $0x18] sm:$0xff]  ;;  %s968_s19 = sshll.u32 %s278_s15, 3 }
  0x22   : > { %1007 = vmatprep.subr.mxu0 %v1380_v15  ;;  %485 = vmatprep.subr.mxu1 %v1546_v44  ;;  %v1552_v45 = vld [vmem:[%s1750_s3 + $0x10] sm:$0xff]  ;;  %v1559_v46 = vld [vmem:[%s1750_s3 + $0x8] sm:$0xff]  ;;  %v1566_v47 = vld [vmem:[%s1750_s3] sm:$0xff]  ;;  %s280_s17 = scalar_lea.vmem [#allocation2], %s968_s19 }
  0x23   : > { %1008 = vmatpush3.msra.mxu0 %v1386_v16  ;;  %486 = vmatpush1.msra.mxu1 %v1552_v45  ;;  %v1612_v61 = vld [vmem:[%s1602_s10 + $0x8] sm:$0xff]  ;;  %v1638_v62 = vld [vmem:[%s1602_s10] sm:$0xff]  ;;  %v1642_v63 = vld [vmem:[%s1602_s10 + $0x18] sm:$0xff]  ;;  %s843_s18 = sshll.u32 %s280_s17, 4  ;;  %s844_s18 = int_to_ptr.vmem [resolvable:$true] %s843_s18 }
  0x24   : > { %1009 = vmatprep.subr.mxu0 %v1402_v19  ;;  %487 = vmatprep.subr.mxu1 %v1559_v46  ;;  %s1133_s11 = scalar_lea.vmem %s844_s18, 128  ;;  %p1140_p0 = scmp.lt.s32.totalorder %s844_s18, %s1138_s25 }
  0x25   : > { %1010 = vmatpush3.msra.mxu0 %v1419_v22  ;;  %488 = vmatpush1.msra.mxu1 %v1566_v47  ;;  %p1134_p11 = scmp.ne.s32.totalorder %s844_s18, %s1133_s11 }
  0x26   : > { %1011 = vmatprep.subr.mxu0 %v1426_v23  ;;  %1037 = vmatprep.subr.mxu1 %v1283_v0  ;;  %v1649_v0 = vld [vmem:[%s1602_s10 + $0x10] sm:$0xff] }
  0x27   : > { %1012 = vmatpush3.msra.mxu0 %v1433_v24  ;;  %p1135_p12 = pnand %p1134_p11, %p1270_p5 }
  0x28   : > { %1013 = vmatprep.subr.mxu0 %v1440_v25 }
  0x29   : > { %1014 = vmatpush3.msra.mxu0 %v1446_v26  ;;  %p1136_p13 = pneg %p1135_p12 }
  0x2a   : > { %1015 = vmatprep.subr.mxu0 %v1452_v27 }
  0x2b   : > { %1016 = vmatpush3.msra.mxu0 %v1458_v28 }
  0x2c   : > { %1017 = vmatprep.subr.mxu0 %v1464_v29 }
  0x2d   : > { %1018 = vmatpush3.msra.mxu0 %v1470_v30 }
  0x2e   : > { %1019 = vmatprep.subr.mxu0 %v1476_v31 }
  0x2f   : > { %1020 = vmatpush3.msra.mxu0 %v1482_v32 }
  0x30   : > { %1021 = vmatprep.subr.mxu0 %v1488_v33 }
  0x31   : > { %1022 = vmatpush3.msra.mxu0 %v1494_v34 }
  0x32   : > { %1023 = vmatprep.subr.mxu0 %v1500_v35 }
  0x33   : > { %1024 = vmatpush3.msra.mxu0 %v1506_v36 }
  0x34   : > { %420 = vmatmul.mubr.f32.vlgmr.msra.gmra.mxu0 %v1510_v37  ;;  %711 = vmatprep.subr.mxu0 %v1391_v17 }
  0x35   : > { %424 = vmatprep.mubr.f32.mxu0 %v1514_v38  ;;  %712 = vmatpush1.msra.mxu0 %v1396_v18 }
  0x36   : > { %713 = vmatprep.subr.mxu0 %v1408_v20 }
  0x37   : > { %714 = vmatpush1.msra.mxu0 %v1413_v21 }
  0x38   : > { %425 = vmatmul.mubr.f32.gmra.mxu0 %v1521_v39  ;;  %715 = vmatprep.subr.mxu0 %v1546_v44 }
  0x39   : > { %429 = vmatprep.mubr.f32.mxu0 %v1525_v40  ;;  %716 = vmatpush1.msra.mxu0 %v1552_v45 }
  0x3a   : > { %717 = vmatprep.subr.mxu0 %v1559_v46 }
  0x3b   : > { %718 = vmatpush1.msra.mxu0 %v1566_v47 }
  0x3c   : > { %430 = vmatmul.mubr.f32.gmra.mxu0 %v1532_v41 }
  0x3d   : > { %434 = vmatprep.mubr.f32.mxu0 %v1535_v42 }
  0x40   : > { %435 = vmatmul.mubr.f32.gmra.mxu0 %v1540_v43 }
  0x41   : > { %751 = vmatprep.mubr.f32.mxu0 %v1195_v48 }
  0xf4   : > { %v1025_v49 = vpop.f32.mrf.mxu0 }
  0xf6   : > { %v1026_v50 = vpop.f32.mrf.mxu0 }
  0xf7   : > { %v1027_v51 = vadd.f32 %v1026_v50, %v1025_v49 }
  0xf8   : > { %v1028_v52 = vpop.f32.mrf.mxu0 }
  0xf9   : > { %441 = vst.msk [vmem:[%s1580_s28] sm:$0xff] %vm440_vm0, %v1027_v51  ;;  %979 = vmatmul.mubr.msk.f32.vlgmr.msra.gmra.mxu1 %vm440_vm0, %v1027_v51 }
  0xfa   : > { %1038 = vmatpush3.msra.mxu1 %v1288_v1  ;;  %v1029_v53 = vpop.f32.mrf.mxu0  ;;  %527 = vmatprep.mubr.f32.mxu1 %v1195_v48  ;;  %v1653_v1 = vld [vmem:[%s1602_s10 + $0x28] sm:$0xff] }
  0xfb   : > { %v1030_v54 = vadd.f32 %v1029_v53, %v1028_v52  ;;  %1039 = vmatprep.subr.mxu1 %v1293_v2  ;;  %v1661_v2 = vld [vmem:[%s1602_s10 + $0x20] sm:$0xff] }
  0xfc   : > { %1040 = vmatpush3.msra.mxu1 %v1300_v3  ;;  %v1031_v55 = vpop.f32.mrf.mxu0  ;;  %v1665_v3 = vld [vmem:[%s1602_s10 + $0x38] sm:$0xff] }
  0xfd   : > { %442 = vst.msk [vmem:[%s1580_s28 + $0x8] sm:$0xff] %vm440_vm0, %v1030_v54  ;;  %1041 = vmatprep.subr.mxu1 %v1306_v4  ;;  %980 = vmatmul.mubr.msk.f32.gmra.mxu1 %vm440_vm0, %v1030_v54  ;;  %v1672_v4 = vld [vmem:[%s1602_s10 + $0x30] sm:$0xff]  ;;  %s822_s10 = scalar_lea.sflag [#allocation3], %s278_s15 }
  0xfe   : > { %1042 = vmatpush3.msra.mxu1 %v1312_v5  ;;  %v1032_v56 = vpop.f32.mrf.mxu0  ;;  %533 = vmatprep.mubr.f32.mxu1 %v1195_v48 }
  0xff   : > { %v1033_v57 = vadd.f32 %v1032_v56, %v1031_v55  ;;  %1043 = vmatprep.subr.mxu1 %v1320_v6 }
 0x100   : > { %1044 = vmatpush3.msra.mxu1 %v1326_v7  ;;  %v1034_v58 = vpop.f32.mrf.mxu0 }
 0x101   : > { %443 = vst.msk [vmem:[%s1580_s28 + $0x10] sm:$0xff] %vm440_vm0, %v1033_v57  ;;  %1045 = vmatprep.subr.mxu1 %v1333_v8  ;;  %981 = vmatmul.mubr.msk.f32.gmra.mxu1 %vm440_vm0, %v1033_v57 }
 0x102   : > { %1046 = vmatpush3.msra.mxu1 %v1339_v9  ;;  %v1035_v59 = vpop.f32.mrf.mxu0  ;;  %539 = vmatprep.mubr.f32.mxu1 %v1195_v48 }
 0x103   : > { %v1036_v60 = vadd.f32 %v1035_v59, %v1034_v58  ;;  %1047 = vmatprep.subr.mxu1 %v1352_v10 }
 0x104   : > { %1048 = vmatpush3.msra.mxu1 %v1358_v11 }
 0x105   : > { %444 = vst.msk [vmem:[%s1580_s28 + $0x18] sm:$0xff] %vm440_vm0, %v1036_v60  ;;  %1049 = vmatprep.subr.mxu1 %v1364_v12  ;;  %982 = vmatmul.mubr.msk.f32.gmra.mxu1 %vm440_vm0, %v1036_v60 }
 0x106   : > { %1050 = vmatpush3.msra.mxu1 %v1373_v14  ;;  %650 = vmatprep.mubr.f32.mxu1 %v1612_v61 }
 0x107   : > { %1051 = vmatprep.subr.mxu1 %v1380_v15 }
 0x108   : > { %1052 = vmatpush3.msra.mxu1 %v1386_v16 }
 0x109   : > { %1053 = vmatprep.subr.mxu1 %v1402_v19 }
 0x10a   : > { %1054 = vmatpush3.msra.mxu1 %v1419_v22 }
 0x10b   : > { %1055 = vmatprep.subr.mxu1 %v1426_v23 }
 0x10c   : > { %1056 = vmatpush3.msra.mxu1 %v1433_v24 }
 0x10d   : > { %1057 = vmatprep.subr.mxu1 %v1440_v25 }
 0x10e   : > { %1058 = vmatpush3.msra.mxu1 %v1446_v26 }
 0x10f   : > { %1059 = vmatprep.subr.mxu1 %v1452_v27 }
 0x110   : > { %1060 = vmatpush3.msra.mxu1 %v1458_v28 }
 0x111   : > { %1061 = vmatprep.subr.mxu1 %v1464_v29 }
 0x112   : > { %1062 = vmatpush3.msra.mxu1 %v1470_v30 }
 0x113   : > { %1063 = vmatprep.subr.mxu1 %v1476_v31 }
 0x114   : > { %1064 = vmatpush3.msra.mxu1 %v1482_v32 }
 0x115   : > { %1065 = vmatprep.subr.mxu1 %v1488_v33 }
 0x116   : > { %1066 = vmatpush3.msra.mxu1 %v1494_v34 }
 0x117   : > { %1067 = vmatprep.subr.mxu1 %v1500_v35 }
 0x118   : > { %1068 = vmatpush3.msra.mxu1 %v1506_v36 }
 0x119   : > { %651 = vmatmul.mubr.f32.vlgmr.msra.gmra.mxu1 %v1638_v62  ;;  %1081 = vmatprep.subr.mxu1 %v1391_v17 }
 0x11a   : > { %655 = vmatprep.mubr.f32.mxu1 %v1642_v63  ;;  %1085 = vmatpush1.msra.mxu1 %v1396_v18 }
 0x11b   : > { %1082 = vmatprep.subr.mxu1 %v1408_v20 }
 0x11c   : > { %1086 = vmatpush1.msra.mxu1 %v1413_v21 }
 0x11d   : > { %656 = vmatmul.mubr.f32.gmra.mxu1 %v1649_v0  ;;  %1083 = vmatprep.subr.mxu1 %v1546_v44 }
 0x11e   : > { %660 = vmatprep.mubr.f32.mxu1 %v1653_v1  ;;  %1087 = vmatpush1.msra.mxu1 %v1552_v45 }
 0x11f   : > { %1084 = vmatprep.subr.mxu1 %v1559_v46 }
 0x120   : > { %1088 = vmatpush1.msra.mxu1 %v1566_v47 }
 0x121   : > { %661 = vmatmul.mubr.f32.gmra.mxu1 %v1661_v2 }
 0x122   : > { %665 = vmatprep.mubr.f32.mxu1 %v1665_v3 }
 0x125   : > { %666 = vmatmul.mubr.f32.gmra.mxu1 %v1672_v4 }
 0x126   : > { %769 = vmatprep.mubr.f32.mxu1 %v1195_v48 }
 0x1b9   : > { %v523_v5 = vpop.f32.mrf.mxu1 }
 0x1ba   : > { %v546_v6 = vsub.f32 %v1510_v37, %v523_v5 }
 0x1bb   : > { %v525_v7 = vpop.f32.mrf.mxu1 }
 0x1bc   : > { %v547_v8 = vsub.f32 %v1367_v13, %v525_v7  ;;  %v554_v10 = vand.u32 2147483647, %v546_v6 }
 0x1bd   : > { %v529_v9 = vpop.f32.mrf.mxu1 }
 0x1be   : > { %v555_v11 = vand.u32 2147483647, %v547_v8  ;;  %v548_v12 = vsub.f32 %v1521_v39, %v529_v9 }
 0x1bf   : > { %v531_v14 = vpop.f32.mrf.mxu1 }
 0x1c0   : > { %v562_v15 = vadd.f32 %v555_v11, %v554_v10  ;;  %v556_v16 = vand.u32 2147483647, %v548_v12  ;;  %v549_v17 = vsub.f32 %v1514_v38, %v531_v14 }
 0x1c1   : > { %v535_v18 = vpop.f32.mrf.mxu1 }
 0x1c2   : > { %v563_v19 = vadd.f32 %v562_v15, %v556_v16  ;;  %v557_v20 = vand.u32 2147483647, %v549_v17  ;;  %v550_v21 = vsub.f32 %v1532_v41, %v535_v18 }
 0x1c3   : > { %v537_v22 = vpop.f32.mrf.mxu1 }
 0x1c4   : > { %v564_v23 = vadd.f32 %v563_v19, %v557_v20  ;;  %v558_v24 = vand.u32 2147483647, %v550_v21  ;;  %v551_v13 = vsub.f32 %v1525_v40, %v537_v22 }
 0x1c5   : > { %v541_v25 = vpop.f32.mrf.mxu1 }
 0x1c6   : > { %v565_v26 = vadd.f32 %v564_v23, %v558_v24  ;;  %v559_v27 = vand.u32 2147483647, %v551_v13  ;;  %v552_v28 = vsub.f32 %v1540_v43, %v541_v25 }
 0x1c7   : > { %v543_v29 = vpop.f32.mrf.mxu1 }
 0x1c8   : > { %v566_v30 = vadd.f32 %v565_v26, %v559_v27  ;;  %v560_v31 = vand.u32 2147483647, %v552_v28  ;;  %v553_v32 = vsub.f32 %v1535_v42, %v543_v29 }
 0x1ca   : > { %v561_v33 = vand.u32 2147483647, %v553_v32  ;;  %v567_v34 = vadd.f32 %v566_v30, %v560_v31 }
 0x1cc   : > { %v568_v35 = vadd.f32 %v567_v34, %v561_v33 }
 0x1ce   : > { %569 = vadd.xlane.f32.xlu0 %v568_v35 }
 0x1d9   : > { %v1069_v36 = vpop.f32.mrf.mxu1 }
 0x1db   : > { %v1070_v37 = vpop.f32.mrf.mxu1 }
 0x1dc   : > { %v1071_v38 = vadd.f32 %v1070_v37, %v1069_v36 }
 0x1dd   : > { %v1072_v39 = vpop.f32.mrf.mxu1 }
 0x1de   : > { %671 = vst.msk [vmem:[%s305_s13] sm:$0xff] %vm440_vm0, %v1071_v38  ;;  %983 = vmatmul.mubr.msk.f32.vlgmr.msra.gmra.mxu0 %vm440_vm0, %v1071_v38 }
 0x1df   : > { %v1073_v40 = vpop.f32.mrf.mxu1  ;;  %757 = vmatprep.mubr.f32.mxu0 %v1195_v48 }
 0x1e0   : > { %v1074_v41 = vadd.f32 %v1073_v40, %v1072_v39 }
 0x1e1   : > { %v1075_v42 = vpop.f32.mrf.mxu1 }
 0x1e2   : > { %672 = vst.msk [vmem:[%s305_s13 + $0x8] sm:$0xff] %vm440_vm0, %v1074_v41  ;;  %984 = vmatmul.mubr.msk.f32.gmra.mxu0 %vm440_vm0, %v1074_v41 }
 0x1e3   : > { %v1076_v43 = vpop.f32.mrf.mxu1  ;;  %763 = vmatprep.mubr.f32.mxu0 %v1195_v48 }
 0x1e4   : > { %v1077_v44 = vadd.f32 %v1076_v43, %v1075_v42 }
 0x1e5   : > { %v1078_v45 = vpop.f32.mrf.mxu1 }
 0x1e6   : > { %673 = vst.msk [vmem:[%s305_s13 + $0x10] sm:$0xff] %vm440_vm0, %v1077_v44  ;;  %985 = vmatmul.mubr.msk.f32.gmra.mxu0 %vm440_vm0, %v1077_v44 }
 0x1e7   : > { %v1079_v46 = vpop.f32.mrf.mxu1 }
 0x1e8   : > { %v1080_v47 = vadd.f32 %v1079_v46, %v1078_v45 }
 0x1ea   : > { %674 = vst.msk [vmem:[%s305_s13 + $0x18] sm:$0xff] %vm440_vm0, %v1080_v47  ;;  %986 = vmatmul.mubr.msk.f32.vlgmr.msra.gmra.mxu1 %vm440_vm0, %v1080_v47  ;;  %s1139_s13 = scalar_lea.vmem %s1138_s25, 256 }
 0x1eb   : > { %p1141_p1 = scmp.lt.s32.totalorder %s1139_s13, %s1133_s11 }
 0x1ed   : > { %p1142_p2 = por %p1141_p1, %p1140_p0 }
 0x1ef   : > { %p1143_p3 = pnand %p1142_p2, %p1136_p13 }
 0x257   : > { %v570_v49 = vpop.xlane.xlu0 %569 }
 0x258   : > { %v571_v50 = vrot.slane %v570_v49, 4 }
 0x25a   : > { %v572_v51 = vadd.f32 %v571_v50, %v570_v49 }
 0x25c   : > { %v573_v52 = vrot.slane %v572_v51, 2 }
 0x25e   : > { %v574_v53 = vadd.f32 %v573_v52, %v572_v51 }
 0x260   : > { %v575_v54 = vrot.slane %v574_v53, 1 }
 0x262   : > { %v576_v55 = vadd.f32 %v575_v54, %v574_v53 }
 0x264   : > { %1089 = vpush %v576_v55 }
 0x295   : > { %s1090_s14 = spop %1089 }
 0x29e   : > { %v753_v48 = vpop.f32.mrf.mxu0 }
 0x29f   : > { %v776_v56 = vsub.f32 %v1638_v62, %v753_v48 }
 0x2a0   : > { %v755_v57 = vpop.f32.mrf.mxu0 }
 0x2a1   : > { %v777_v58 = vsub.f32 %v1612_v61, %v755_v57  ;;  %v784_v60 = vand.u32 2147483647, %v776_v56 }
 0x2a2   : > { %v759_v59 = vpop.f32.mrf.mxu0 }
 0x2a3   : > { %v785_v5 = vand.u32 2147483647, %v777_v58  ;;  %v778_v6 = vsub.f32 %v1649_v0, %v759_v59 }
 0x2a4   : > { %v761_v7 = vpop.f32.mrf.mxu0 }
 0x2a5   : > { %v792_v8 = vadd.f32 %v785_v5, %v784_v60  ;;  %v786_v9 = vand.u32 2147483647, %v778_v6  ;;  %v779_v10 = vsub.f32 %v1642_v63, %v761_v7 }
 0x2a6   : > { %v765_v11 = vpop.f32.mrf.mxu0 }
 0x2a7   : > { %v793_v12 = vadd.f32 %v792_v8, %v786_v9  ;;  %v787_v14 = vand.u32 2147483647, %v779_v10  ;;  %v780_v15 = vsub.f32 %v1661_v2, %v765_v11 }
 0x2a8   : > { %v767_v16 = vpop.f32.mrf.mxu0 }
 0x2a9   : > { %v794_v62 = vadd.f32 %v793_v12, %v787_v14  ;;  %v788_v17 = vand.u32 2147483647, %v780_v15  ;;  %v781_v61 = vsub.f32 %v1653_v1, %v767_v16 }
 0x2aa   : > { %v771_v18 = vpop.f32.mrf.mxu1 }
 0x2ab   : > { %v795_v19 = vadd.f32 %v794_v62, %v788_v17  ;;  %v789_v20 = vand.u32 2147483647, %v781_v61  ;;  %v782_v0 = vsub.f32 %v1672_v4, %v771_v18 }
 0x2ac   : > { %v773_v21 = vpop.f32.mrf.mxu1 }
 0x2ad   : > { %v796_v22 = vadd.f32 %v795_v19, %v789_v20  ;;  %v790_v23 = vand.u32 2147483647, %v782_v0  ;;  %v783_v63 = vsub.f32 %v1665_v3, %v773_v21 }
 0x2af   : > { %v797_v24 = vadd.f32 %v796_v22, %v790_v23  ;;  %v791_v13 = vand.u32 2147483647, %v783_v63 }
 0x2b1   : > { %v798_v2 = vadd.f32 %v797_v24, %v791_v13 }
 0x2b3   : > { %799 = vadd.xlane.f32.xlu0 %v798_v2 }
 0x33c   : > { %v800_v25 = vpop.xlane.xlu0 %799 }
 0x33d   : > { %v801_v26 = vrot.slane %v800_v25, 4 }
 0x33f   : > { %v802_v27 = vadd.f32 %v801_v26, %v800_v25 }
 0x341   : > { %v803_v1 = vrot.slane %v802_v27, 2 }
 0x343   : > { %v804_v28 = vadd.f32 %v803_v1, %v802_v27 }
 0x345   : > { %v805_v29 = vrot.slane %v804_v28, 1 }
 0x347   : > { %v806_v30 = vadd.f32 %v805_v29, %v804_v28 }
 0x349   : > { %1091 = vpush %v806_v30 }
 0x37a   : > { %s1092_s20 = spop %1091 }
 0x37b   : > { %s808_s26 = sadd.f32 %s1092_s20, %s1090_s14 }
 0x37d   : > { %v809_v3 = vstv %s808_s26 }
 0x37e   : > { %810 = vst [vmem:[%s280_s17] sm:$0xff] %v809_v3 }
 0x37f   : > { %1146 = shalt.err (!%p1143_p3)
}
 0x380   : > { %s1147_s19 = scalar_lea.hbm %s1712_s9, 128  ;;  %s1151_s16 = scalar_lea.hbm %s1753_s6, 256 }
 0x381   : > { %p1148_p4 = scmp.ne.s32.totalorder %s1712_s9, %s1147_s19  ;;  %p1152_p9 = scmp.lt.s32.totalorder %s1712_s9, %s1753_s6 }
 0x382   : > { %p1153_p10 = scmp.lt.s32.totalorder %s1151_s16, %s1147_s19 }
 0x383   : > { %p1149_p7 = pnand %p1148_p4, %p1270_p5 }
 0x384   : > { %p1154_p11 = por %p1153_p10, %p1152_p9 }
 0x385   : > { %p1150_p8 = pneg %p1149_p7 }
 0x387   : > { %p1155_p12 = pnand %p1154_p11, %p1150_p8 }
 0x389   : > { %1158 = shalt.err (!%p1155_p12)
}
 0x38a   : > { %1093 = dma.vmem_to_hbm [thread:$0]  (%p1270_p5), %s844_s18, 128, %s1712_s9, %s822_s10  }
 0x38b PF: > { %p1099_p13 = scmp.ge.s32.totalorder %s1193_s24, 2  ;;  %s871_s26 = sand.u32 1, %s1181_s21  }
 0x38c   : > { %s872_s28 = scalar_lea.sflag [#allocation3], %s871_s26 }
 0x38d   : > { %p1096_p0 = pnand %p1099_p13, %p1274_p6 }
 0x38f   : > { %p1097_p1 = pneg %p1096_p0 }
 0x391   : > { %1176 = dma.done.wait (%p1097_p1), %s872_s28, 128  }
 0x392   : > { %1178 = vsyncadd (%p1097_p1), %s872_s28, 4294967168  ;;  %p17_p2 = scmp.ge.s32.totalorder %s1257_s27, 4   ;;  %s1756_s21 = smov %s1185_s22 }
 0x393   : > { %s1757_s22 = smov %s1189_s23  ;;  %s1758_s23 = smov %s1268_s30 }
 0x394   : > { %s1759_s24 = smov %s1257_s27  ;;  %19 = sbr.rel (!%p17_p2) target bundleno = 3 (0x3), region = 98 }
 0x399   :  { %877 = vsyncpa [#allocation3], 1 }
 0x39a   :  { %879 = vsyncpa [#allocation3 + $0x1], 1 }

</bundles_post_ra>
